<compile_context>
chip_gen: v7x
topology: tpu7x:2x2x1
jax: 0.10.0
libtpu: 0.0.40
codegen_flags: <defaults>
</compile_context>

<pallas_src>
import functools

import jax
import jax.numpy as jnp
from jax.experimental import pallas as pl
from jax.experimental.pallas import tpu as pltpu


def _round_up(n, m):
    return (n + m - 1) // m * m


def _cdiv(a, b):
    return (a + b - 1) // b


def vae_kernel(x_ref, eps_ref,
               w1_ref, b1_ref, w2_ref, b2_ref,
               w3c_ref, b3c_ref, w4_ref, b4_ref,
               out_ref, *, input_dim, latent_dim, hidden):
    f32 = jnp.float32
    cdt = x_ref.dtype
    D, L, H = input_dim, latent_dim, hidden

    # encode: h = relu(fc1(x)); mu = fc2(h); log_var = fc2(h) == mu
    x = x_ref[...]
    h = jnp.maximum(
        jnp.dot(x, w1_ref[...], preferred_element_type=f32) + b1_ref[...], 0.0)
    mu = jnp.dot(h.astype(cdt), w2_ref[...],
                 preferred_element_type=f32) + b2_ref[...]

    # reparameterize: z = mu + eps * exp(0.5 * log_var), with log_var == mu
    z = mu + eps_ref[...].astype(f32) * jnp.exp(0.5 * mu)

    # decoder fc3 + classifier fused into one MXU pass (K = latent_dim, no pad)
    h2c = jnp.dot(z.astype(cdt), w3c_ref[...],
                  preferred_element_type=f32) + b3c_ref[...]
    h2 = jnp.maximum(h2c[:, :H], 0.0)          # decoder path (relu)
    y_pred = h2c[:, H:H + 1]                   # classifier path (no relu)

    recon = jnp.dot(h2.astype(cdt), w4_ref[...],
                    preferred_element_type=f32) + b4_ref[...]

    # pack all three results into one 128-lane output slab (single HBM stream)
    out_ref[:, :D] = recon
    out_ref[:, D:D + L] = mu
    out_ref[:, D + L:D + L + 1] = y_pred


def prepare_params(params, compute_dtype=jnp.bfloat16, classifier_pad=128):
    """One-time weight prep: bf16 cast + classifier fused into fc3 columns.

    Call ONCE at init; the result is reused by every vae_forward call so the
    pad / cast traffic is not paid per forward pass.
    """
    cdt = compute_dtype
    f32 = jnp.float32
    D, H = params["w1"].shape
    L = params["w2"].shape[1]
    Cp = classifier_pad

    w3c = jnp.zeros((L, H + Cp), cdt)
    w3c = w3c.at[:, :H].set(params["w3"].astype(cdt))
    w3c = w3c.at[:, H:H + 1].set(params["wc"].astype(cdt))
    b3c = jnp.zeros((1, H + Cp), f32)
    b3c = b3c.at[:, :H].set(params["b3"].astype(f32))
    b3c = b3c.at[:, H:H + 1].set(params["bc"].astype(f32))

    return dict(
        w1=params["w1"].astype(cdt), b1=params["b1"].astype(f32),
        w2=params["w2"].astype(cdt), b2=params["b2"].astype(f32),
        w3c=w3c, b3c=b3c,
        w4=params["w4"].astype(cdt), b4=params["b4"].astype(f32),
    )


def vae_forward(x, eps, prep, *, max_batch_tile=512, min_core_split=256):
    """Fused VAE forward.

    x:    (B, input_dim)  float32
    eps:  (B, latent_dim) float32 reparameterization noise (torch.randn_like)
    prep: output of prepare_params()
    Returns (recon_x, mu, log_var, y_pred), with log_var aliased to mu
    (the reference module applies fc2 twice to the same h).
    """
    f32 = jnp.float32
    w1, b1, w2, b2 = prep["w1"], prep["b1"], prep["w2"], prep["b2"]
    w3c, b3c, w4, b4 = prep["w3c"], prep["b3c"], prep["w4"], prep["b4"]
    cdt = w1.dtype
    D, H = w1.shape
    L = w2.shape[1]
    HC = w3c.shape[1]                      # H + classifier pad
    B = x.shape[0]
    Wout = _round_up(D + L + 1, 128)       # packed output slab width

    # ---- remainder-aware batch tiling --------------------------------------
    Bp = _round_up(B, 8)
    num_tiles = _cdiv(Bp, max_batch_tile)
    # keep >= 2 grid steps when the batch is big enough so the "parallel"
    # grid axis can shard across both TensorCores (v7x megacore)
    if num_tiles < 2 and Bp >= 2 * min_core_split:
        num_tiles = 2
    TB = _round_up(_cdiv(Bp, num_tiles), 8)
    Bp = TB * num_tiles
    grid = (num_tiles,)

    # ---- activation inputs: bf16 cast folded into the (possibly trivial) pad
    if Bp == B:
        xp = x.astype(cdt)
        epsp = eps.astype(cdt)
    else:
        xp = jnp.zeros((Bp, D), cdt).at[:B].set(x.astype(cdt))
        epsp = jnp.zeros((Bp, L), cdt).at[:B].set(eps.astype(cdt))

    def act_spec(cols):
        return pl.BlockSpec((TB, cols), lambda i: (i, 0))

    def fixed_spec(shape):
        return pl.BlockSpec(shape, lambda i: (0, 0))   # resident across grid

    itemsize = jnp.dtype(cdt).itemsize
    cost = pl.CostEstimate(
        flops=2 * Bp * (D * H + H * L + L * HC + H * D),
        transcendentals=Bp * L,
        bytes_accessed=(
            itemsize * (Bp * D + Bp * L)
            + itemsize * (w1.size + w2.size + w3c.size + w4.size)
            + 4 * (b1.size + b2.size + b3c.size + b4.size)
            + 4 * Bp * Wout),
    )

    kernel = functools.partial(vae_kernel, input_dim=D, latent_dim=L, hidden=H)

    out_p = pl.pallas_call(
        kernel,
        out_shape=jax.ShapeDtypeStruct((Bp, Wout), f32),
        grid=grid,
        in_specs=[
            act_spec(D),              # x (bf16, unpadded lanes)
            act_spec(L),              # eps (bf16, unpadded lanes)
            fixed_spec((D, H)),       # w1
            fixed_spec((1, H)),       # b1
            fixed_spec((H, L)),       # w2 (true latent width)
            fixed_spec((1, L)),       # b2
            fixed_spec((L, HC)),      # [w3 | wc | 0] fused
            fixed_spec((1, HC)),      # [b3 | bc | 0] fused
            fixed_spec((H, D)),       # w4 (true recon width)
            fixed_spec((1, D)),       # b4
        ],
        out_specs=pl.BlockSpec((TB, Wout), lambda i: (i, 0)),
        compiler_params=pltpu.CompilerParams(
            dimension_semantics=("parallel",),
            vmem_limit_bytes=32 << 20,
        ),
        cost_estimate=cost,
    )(xp, epsp, w1, b1, w2, b2, w3c, b3c, w4, b4)

    recon_x = out_p[:B, :D]
    mu = out_p[:B, D:D + L]
    log_var = mu                        # fc2 applied twice to the same h
    y_pred = out_p[:B, D + L:D + L + 1]
    return recon_x, mu, log_var, y_pred


def init_params(key, input_dim, latent_dim, hidden=512):
    """Deterministic PyTorch-style Linear init (uniform +-1/sqrt(fan_in)).
    Weights stored as (in_features, out_features), float32."""
    def linear(k, fan_in, fan_out):
        kw, kb = jax.random.split(k)
        bound = 1.0 / jnp.sqrt(fan_in)
        w = jax.random.uniform(kw, (fan_in, fan_out), jnp.float32, -bound, bound)
        b = jax.random.uniform(kb, (1, fan_out), jnp.float32, -bound, bound)
        return w, b

    k1, k2, k3, k4, kc = jax.random.split(key, 5)
    w1, b1 = linear(k1, input_dim, hidden)     # fc1
    w2, b2 = linear(k2, hidden, latent_dim)    # fc2
    w3, b3 = linear(k3, latent_dim, hidden)    # fc3
    w4, b4 = linear(k4, hidden, input_dim)     # fc4
    wc, bc = linear(kc, latent_dim, 1)         # classifier
    return dict(w1=w1, b1=b1, w2=w2, b2=b2, w3=w3, b3=b3,
                w4=w4, b4=b4, wc=wc, bc=bc)


if __name__ == "__main__":
    B, INPUT_DIM, LATENT_DIM, BETA = 8, 64, 32, 1.0   # beta unused in forward

    key = jax.random.PRNGKey(0)
    kx, keps, kp = jax.random.split(key, 3)

    x = jax.random.normal(kx, (B, INPUT_DIM), jnp.float32)
    eps = jax.random.normal(keps, (B, LATENT_DIM), jnp.float32)  # torch.randn_like
    params = init_params(kp, INPUT_DIM, LATENT_DIM)

    # one-time weight prep, hoisted out of the per-call path
    prep = jax.block_until_ready(prepare_params(params))

    recon_x, mu, log_var, y_pred = jax.block_until_ready(
        vae_forward(x, eps, prep))

    # ---- sanity check vs a plain-JAX reference using the same bf16 matmuls ----
    cdt = jnp.bfloat16
    epsq = eps.astype(cdt).astype(jnp.float32)   # kernel ships eps in bf16

    def dotf(a, w):
        return jnp.dot(a.astype(cdt), w.astype(cdt),
                       preferred_element_type=jnp.float32)

    h_r = jnp.maximum(dotf(x, params["w1"]) + params["b1"], 0.0)
    mu_r = dotf(h_r, params["w2"]) + params["b2"]
    z_r = mu_r + epsq * jnp.exp(0.5 * mu_r)
    h2_r = jnp.maximum(dotf(z_r, params["w3"]) + params["b3"], 0.0)
    recon_r = dotf(h2_r, params["w4"]) + params["b4"]
    ypred_r = dotf(z_r, params["wc"]) + params["bc"]

    assert recon_x.shape == (B, INPUT_DIM)
    assert mu.shape == (B, LATENT_DIM) and log_var.shape == (B, LATENT_DIM)
    assert y_pred.shape == (B, 1)
    assert jnp.allclose(recon_x, recon_r, atol=5e-3, rtol=5e-3)
    assert jnp.allclose(mu, mu_r, atol=5e-3, rtol=5e-3)
    assert jnp.allclose(log_var, mu_r, atol=5e-3, rtol=5e-3)
    assert jnp.allclose(y_pred, ypred_r, atol=5e-3, rtol=5e-3)

    print("KERNEL_OK")
</pallas_src>

<mosaic_0001>
module attributes {stable_mosaic.version = 11 : i64} {
  func.func @vae_kernel(%arg0: i32, %arg1: memref<8x64xbf16, #tpu.memory_space<vmem>>, %arg2: memref<8x32xbf16, #tpu.memory_space<vmem>>, %arg3: memref<64x512xbf16, #tpu.memory_space<vmem>>, %arg4: memref<1x512xf32, #tpu.memory_space<vmem>>, %arg5: memref<512x32xbf16, #tpu.memory_space<vmem>>, %arg6: memref<1x32xf32, #tpu.memory_space<vmem>>, %arg7: memref<32x640xbf16, #tpu.memory_space<vmem>>, %arg8: memref<1x640xf32, #tpu.memory_space<vmem>>, %arg9: memref<512x64xbf16, #tpu.memory_space<vmem>>, %arg10: memref<1x64xf32, #tpu.memory_space<vmem>>, %arg11: memref<8x128xf32, #tpu.memory_space<vmem>>) attributes {dimension_semantics = [#tpu.dimension_semantics<parallel>], iteration_bounds = array<i64: 1>, scalar_prefetch = 0 : i64, scratch_operands = 0 : i64, tpu.core_type = #tpu.core_type<tc>, window_params = [{transform_indices = @transform_0, window_bounds = array<i64: 8, 64>}, {transform_indices = @transform_1, window_bounds = array<i64: 8, 32>}, {pipeline_mode = #tpu.pipeline_mode<synchronous>, transform_indices = @transform_2, window_bounds = array<i64: 64, 512>}, {pipeline_mode = #tpu.pipeline_mode<synchronous>, transform_indices = @transform_3, window_bounds = array<i64: 1, 512>}, {pipeline_mode = #tpu.pipeline_mode<synchronous>, transform_indices = @transform_4, window_bounds = array<i64: 512, 32>}, {pipeline_mode = #tpu.pipeline_mode<synchronous>, transform_indices = @transform_5, window_bounds = array<i64: 1, 32>}, {pipeline_mode = #tpu.pipeline_mode<synchronous>, transform_indices = @transform_6, window_bounds = array<i64: 32, 640>}, {pipeline_mode = #tpu.pipeline_mode<synchronous>, transform_indices = @transform_7, window_bounds = array<i64: 1, 640>}, {pipeline_mode = #tpu.pipeline_mode<synchronous>, transform_indices = @transform_8, window_bounds = array<i64: 512, 64>}, {pipeline_mode = #tpu.pipeline_mode<synchronous>, transform_indices = @transform_9, window_bounds = array<i64: 1, 64>}, {transform_indices = @transform_10, window_bounds = array<i64: 8, 128>}]} {
    %c0 = arith.constant 0 : index
    %c0_0 = arith.constant 0 : index
    %0 = vector.load %arg1[%c0, %c0_0] : memref<8x64xbf16, #tpu.memory_space<vmem>>, vector<8x64xbf16>
    %c0_1 = arith.constant 0 : index
    %c0_2 = arith.constant 0 : index
    %1 = vector.load %arg3[%c0_1, %c0_2] : memref<64x512xbf16, #tpu.memory_space<vmem>>, vector<64x512xbf16>
    %cst = arith.constant dense<0.000000e+00> : vector<8x512xf32>
    %2 = tpu.matmul %0, %1, %cst {dimension_numbers = #tpu.dot_dimension_numbers<[1], [0], [0], [1], [0, 0, 1, 1], [], []>} : vector<8x64xbf16>, vector<64x512xbf16>, vector<8x512xf32> -> vector<8x512xf32>
    %c0_3 = arith.constant 0 : index
    %c0_4 = arith.constant 0 : index
    %3 = vector.load %arg4[%c0_3, %c0_4] : memref<1x512xf32, #tpu.memory_space<vmem>>, vector<1x512xf32>
    %4 = vector.broadcast %3 : vector<1x512xf32> to vector<8x512xf32>
    %5 = arith.addf %2, %4 : vector<8x512xf32>
    %cst_5 = arith.constant 0.000000e+00 : f32
    %6 = vector.broadcast %cst_5 : f32 to vector<8x512xf32>
    %7 = arith.maximumf %5, %6 : vector<8x512xf32>
    %8 = arith.truncf %7 : vector<8x512xf32> to vector<8x512xbf16>
    %c0_6 = arith.constant 0 : index
    %c0_7 = arith.constant 0 : index
    %9 = vector.load %arg5[%c0_6, %c0_7] : memref<512x32xbf16, #tpu.memory_space<vmem>>, vector<512x32xbf16>
    %cst_8 = arith.constant dense<0.000000e+00> : vector<8x32xf32>
    %10 = tpu.matmul %8, %9, %cst_8 {dimension_numbers = #tpu.dot_dimension_numbers<[1], [0], [0], [1], [0, 0, 1, 1], [], []>} : vector<8x512xbf16>, vector<512x32xbf16>, vector<8x32xf32> -> vector<8x32xf32>
    %c0_9 = arith.constant 0 : index
    %c0_10 = arith.constant 0 : index
    %11 = vector.load %arg6[%c0_9, %c0_10] : memref<1x32xf32, #tpu.memory_space<vmem>>, vector<1x32xf32>
    %12 = vector.broadcast %11 : vector<1x32xf32> to vector<8x32xf32>
    %13 = arith.addf %10, %12 : vector<8x32xf32>
    %c0_11 = arith.constant 0 : index
    %c0_12 = arith.constant 0 : index
    %14 = vector.load %arg2[%c0_11, %c0_12] : memref<8x32xbf16, #tpu.memory_space<vmem>>, vector<8x32xbf16>
    %15 = arith.extf %14 : vector<8x32xbf16> to vector<8x32xf32>
    %cst_13 = arith.constant 5.000000e-01 : f32
    %16 = vector.broadcast %cst_13 : f32 to vector<8x32xf32>
    %17 = arith.mulf %16, %13 : vector<8x32xf32>
    %18 = math.exp %17 : vector<8x32xf32>
    %19 = arith.mulf %15, %18 : vector<8x32xf32>
    %20 = arith.addf %13, %19 : vector<8x32xf32>
    %21 = arith.truncf %20 : vector<8x32xf32> to vector<8x32xbf16>
    %c0_14 = arith.constant 0 : index
    %c0_15 = arith.constant 0 : index
    %22 = vector.load %arg7[%c0_14, %c0_15] : memref<32x640xbf16, #tpu.memory_space<vmem>>, vector<32x640xbf16>
    %cst_16 = arith.constant dense<0.000000e+00> : vector<8x640xf32>
    %23 = tpu.matmul %21, %22, %cst_16 {dimension_numbers = #tpu.dot_dimension_numbers<[1], [0], [0], [1], [0, 0, 1, 1], [], []>} : vector<8x32xbf16>, vector<32x640xbf16>, vector<8x640xf32> -> vector<8x640xf32>
    %c0_17 = arith.constant 0 : index
    %c0_18 = arith.constant 0 : index
    %24 = vector.load %arg8[%c0_17, %c0_18] : memref<1x640xf32, #tpu.memory_space<vmem>>, vector<1x640xf32>
    %25 = vector.broadcast %24 : vector<1x640xf32> to vector<8x640xf32>
    %26 = arith.addf %23, %25 : vector<8x640xf32>
    %27 = vector.extract_strided_slice %26 {offsets = [0, 0], sizes = [8, 512], strides = [1, 1]} : vector<8x640xf32> to vector<8x512xf32>
    %cst_19 = arith.constant 0.000000e+00 : f32
    %28 = vector.broadcast %cst_19 : f32 to vector<8x512xf32>
    %29 = arith.maximumf %27, %28 : vector<8x512xf32>
    %30 = vector.extract_strided_slice %26 {offsets = [0, 512], sizes = [8, 1], strides = [1, 1]} : vector<8x640xf32> to vector<8x1xf32>
    %31 = arith.truncf %29 : vector<8x512xf32> to vector<8x512xbf16>
    %c0_20 = arith.constant 0 : index
    %c0_21 = arith.constant 0 : index
    %32 = vector.load %arg9[%c0_20, %c0_21] : memref<512x64xbf16, #tpu.memory_space<vmem>>, vector<512x64xbf16>
    %cst_22 = arith.constant dense<0.000000e+00> : vector<8x64xf32>
    %33 = tpu.matmul %31, %32, %cst_22 {dimension_numbers = #tpu.dot_dimension_numbers<[1], [0], [0], [1], [0, 0, 1, 1], [], []>} : vector<8x512xbf16>, vector<512x64xbf16>, vector<8x64xf32> -> vector<8x64xf32>
    %c0_23 = arith.constant 0 : index
    %c0_24 = arith.constant 0 : index
    %34 = vector.load %arg10[%c0_23, %c0_24] : memref<1x64xf32, #tpu.memory_space<vmem>>, vector<1x64xf32>
    %35 = vector.broadcast %34 : vector<1x64xf32> to vector<8x64xf32>
    %36 = arith.addf %33, %35 : vector<8x64xf32>
    %c0_25 = arith.constant 0 : index
    %c0_26 = arith.constant 0 : index
    %37 = vector.load %arg11[%c0_25, %c0_26] : memref<8x128xf32, #tpu.memory_space<vmem>>, vector<8x64xf32>
    tpu.vector_store %arg11[%c0_25, %c0_26], %36 {strides = array<i32>} : memref<8x128xf32, #tpu.memory_space<vmem>>, vector<8x64xf32>,
    %c0_27 = arith.constant 0 : index
    %c64 = arith.constant 64 : index
    %38 = vector.load %arg11[%c0_27, %c64] : memref<8x128xf32, #tpu.memory_space<vmem>>, vector<8x32xf32>
    tpu.vector_store %arg11[%c0_27, %c64], %13 {strides = array<i32>} : memref<8x128xf32, #tpu.memory_space<vmem>>, vector<8x32xf32>,
    %c0_28 = arith.constant 0 : index
    %c96 = arith.constant 96 : index
    %39 = vector.load %arg11[%c0_28, %c96] : memref<8x128xf32, #tpu.memory_space<vmem>>, vector<8x1xf32>
    tpu.vector_store %arg11[%c0_28, %c96], %30 {strides = array<i32>} : memref<8x128xf32, #tpu.memory_space<vmem>>, vector<8x1xf32>,
    return
  }
  func.func @transform_0(%arg0: i32) -> (i32, i32) {
    %c0_i32 = arith.constant 0 : i32
    %c0_i32_0 = arith.constant 0 : i32
    return %arg0, %c0_i32 : i32, i32
  }
  func.func @transform_1(%arg0: i32) -> (i32, i32) {
    %c0_i32 = arith.constant 0 : i32
    %c0_i32_0 = arith.constant 0 : i32
    return %arg0, %c0_i32 : i32, i32
  }
  func.func @transform_2(%arg0: i32) -> (i32, i32) {
    %c0_i32 = arith.constant 0 : i32
    %c0_i32_0 = arith.constant 0 : i32
    %c0_i32_1 = arith.constant 0 : i32
    return %c0_i32, %c0_i32_0 : i32, i32
  }
  func.func @transform_3(%arg0: i32) -> (i32, i32) {
    %c0_i32 = arith.constant 0 : i32
    %c0_i32_0 = arith.constant 0 : i32
    %c0_i32_1 = arith.constant 0 : i32
    return %c0_i32, %c0_i32_0 : i32, i32
  }
  func.func @transform_4(%arg0: i32) -> (i32, i32) {
    %c0_i32 = arith.constant 0 : i32
    %c0_i32_0 = arith.constant 0 : i32
    %c0_i32_1 = arith.constant 0 : i32
    return %c0_i32, %c0_i32_0 : i32, i32
  }
  func.func @transform_5(%arg0: i32) -> (i32, i32) {
    %c0_i32 = arith.constant 0 : i32
    %c0_i32_0 = arith.constant 0 : i32
    %c0_i32_1 = arith.constant 0 : i32
    return %c0_i32, %c0_i32_0 : i32, i32
  }
  func.func @transform_6(%arg0: i32) -> (i32, i32) {
    %c0_i32 = arith.constant 0 : i32
    %c0_i32_0 = arith.constant 0 : i32
    %c0_i32_1 = arith.constant 0 : i32
    return %c0_i32, %c0_i32_0 : i32, i32
  }
  func.func @transform_7(%arg0: i32) -> (i32, i32) {
    %c0_i32 = arith.constant 0 : i32
    %c0_i32_0 = arith.constant 0 : i32
    %c0_i32_1 = arith.constant 0 : i32
    return %c0_i32, %c0_i32_0 : i32, i32
  }
  func.func @transform_8(%arg0: i32) -> (i32, i32) {
    %c0_i32 = arith.constant 0 : i32
    %c0_i32_0 = arith.constant 0 : i32
    %c0_i32_1 = arith.constant 0 : i32
    return %c0_i32, %c0_i32_0 : i32, i32
  }
  func.func @transform_9(%arg0: i32) -> (i32, i32) {
    %c0_i32 = arith.constant 0 : i32
    %c0_i32_0 = arith.constant 0 : i32
    %c0_i32_1 = arith.constant 0 : i32
    return %c0_i32, %c0_i32_0 : i32, i32
  }
  func.func @transform_10(%arg0: i32) -> (i32, i32) {
    %c0_i32 = arith.constant 0 : i32
    %c0_i32_0 = arith.constant 0 : i32
    return %arg0, %c0_i32 : i32, i32
  }
}

</mosaic_0001>

<bundles_post_ra>
// kernel: tpu_custom_call.1
= control target key start
LH: loop header
LB: loop body
LE: loop exit
PB: predicated region body
PF: predicated region fallthrough
CT: control target
= control target key end

     0   :  { %v1526_v2 = vmov 0   ;;  %vm156_vm0 = vcmask 523264   ;;  %s1920_s0 = inlined_call_operand.vmem [shape: bf16[8,64], index: 0, kind: input, shape index: {}]   ;;  %s1921_s1 = inlined_call_operand.vmem [shape: bf16[8,32], index: 1, kind: input, shape index: {}]   ;;  %s1922_s2 = inlined_call_operand.vmem [shape: bf16[64,512], index: 2, kind: input, shape index: {}]   ;;  %s1923_s3 = inlined_call_operand.vmem [shape: f32[1,512], index: 3, kind: input, shape index: {}]   ;;  %s1924_s4 = inlined_call_operand.vmem [shape: bf16[512,32], index: 4, kind: input, shape index: {}]   ;;  %s1925_s5 = inlined_call_operand.vmem [shape: f32[1,32], index: 5, kind: input, shape index: {}]   ;;  %s1926_s6 = inlined_call_operand.vmem [shape: bf16[32,640], index: 6, kind: input, shape index: {}]   ;;  %s1927_s7 = inlined_call_operand.vmem [shape: f32[1,640], index: 7, kind: input, shape index: {}]   ;;  %s1928_s8 = inlined_call_operand.vmem [shape: bf16[512,64], index: 8, kind: input, shape index: {}]   ;;  %s1929_s9 = inlined_call_operand.vmem [shape: f32[1,64], index: 9, kind: input, shape index: {}]   ;;  %s1930_s10 = inlined_call_operand.hbm [shape: f32[8,128], index: 10, kind: output, shape index: {}]  }
   0x1   :  { %v1398_v0 = vld [vmem:[%s1922_s2 + $0x4] ss:$16 sps:$4 sm:$0xff]   ;;  %v1400_v1 = vld [vmem:[%s1922_s2 + $0xc] ss:$16 sps:$4 sm:$0xff]   ;;  %192 = vmatprep.mubr.bf16.mxu0 %v1526_v2  ;;  %233 = vmatprep.mubr.bf16.mxu1 %v1526_v2  ;;  %v1402_v3 = vld [vmem:[%s1922_s2] ss:$16 sps:$4 sm:$0xff]  }
   0x2   :  { %160 = vmatprep.subr.bf16.mxu0 %v1398_v0  ;;  %v1403_v4 = vld [vmem:[%s1922_s2 + $0x8] ss:$16 sps:$4 sm:$0xff]   ;;  %201 = vmatprep.subr.bf16.mxu1 %v1400_v1  ;;  %v1404_v5 = vld [vmem:[%s1922_s2 + $0x24] ss:$16 sps:$4 sm:$0xff]   ;;  %v1406_v6 = vld [vmem:[%s1922_s2 + $0x2c] ss:$16 sps:$4 sm:$0xff]  }
   0x3   :  { %161 = vmatpush1.bf16.msra.mxu0 %v1402_v3  ;;  %202 = vmatpush1.bf16.msra.mxu1 %v1403_v4  ;;  %v1408_v7 = vld [vmem:[%s1922_s2 + $0x20] ss:$16 sps:$4 sm:$0xff]   ;;  %v1409_v8 = vld [vmem:[%s1922_s2 + $0x28] ss:$16 sps:$4 sm:$0xff]   ;;  %v1410_v9 = vld [vmem:[%s1922_s2 + $0x44] ss:$16 sps:$4 sm:$0xff]  }
   0x4   :  { %162 = vmatprep.subr.bf16.mxu0 %v1404_v5  ;;  %203 = vmatprep.subr.bf16.mxu1 %v1406_v6  ;;  %v1412_v10 = vld [vmem:[%s1922_s2 + $0x4c] ss:$16 sps:$4 sm:$0xff]   ;;  %v1414_v11 = vld [vmem:[%s1922_s2 + $0x40] ss:$16 sps:$4 sm:$0xff]   ;;  %v1415_v12 = vld [vmem:[%s1922_s2 + $0x48] ss:$16 sps:$4 sm:$0xff]  }
   0x5   :  { %v1416_v13 = vld [vmem:[%s1922_s2 + $0x64] ss:$16 sps:$4 sm:$0xff]   ;;  %v1418_v14 = vld [vmem:[%s1922_s2 + $0x6c] ss:$16 sps:$4 sm:$0xff]   ;;  %v1420_v15 = vld [vmem:[%s1922_s2 + $0x60] ss:$16 sps:$4 sm:$0xff]  }
   0x6   :  { %v1421_v16 = vld [vmem:[%s1922_s2 + $0x68] ss:$16 sps:$4 sm:$0xff]   ;;  %v1422_v17 = vld [vmem:[%s1924_s4 + $0x40] sm:$0xff]   ;;  %v1430_v26 = vld [vmem:[%s1924_s4 + $0x50] sm:$0xff]  }
   0x7   :  { %163 = vmatpush1.bf16.msra.mxu0 %v1408_v7  ;;  %204 = vmatpush1.bf16.msra.mxu1 %v1409_v8  ;;  %v1423_v18 = vld [vmem:[%s1924_s4 + $0xc0] sm:$0xff]   ;;  %v1426_v22 = vld [vmem:[%s1924_s4 + $0x48] sm:$0xff]   ;;  %v1431_v27 = vld [vmem:[%s1924_s4 + $0xd0] sm:$0xff]  }
   0x8   :  { %164 = vmatprep.subr.bf16.mxu0 %v1410_v9  ;;  %205 = vmatprep.subr.bf16.mxu1 %v1412_v10  ;;  %v37_v19 = vld [vmem:[%s1920_s0] sm:$0xf]  ;;  %v1427_v23 = vld [vmem:[%s1924_s4 + $0xc8] sm:$0xff]   ;;  %v1432_v28 = vld [vmem:[%s1924_s4 + $0x10] sm:$0xff]  }
   0x9   :  { %v1424_v20 = vld [vmem:[%s1924_s4] sm:$0xff]   ;;  %v1428_v24 = vld [vmem:[%s1924_s4 + $0x8] sm:$0xff]   ;;  %v1433_v29 = vld [vmem:[%s1924_s4 + $0x90] sm:$0xff]  }
   0xa   :  { %v1425_v21 = vld [vmem:[%s1924_s4 + $0x80] sm:$0xff]   ;;  %v1429_v25 = vld [vmem:[%s1924_s4 + $0x88] sm:$0xff]   ;;  %v1434_v30 = vld [vmem:[%s1924_s4 + $0x58] sm:$0xff]  }
   0xb   :  { %165 = vmatpush1.bf16.msra.mxu0 %v1414_v11  ;;  %206 = vmatpush1.bf16.msra.mxu1 %v1415_v12  ;;  %v1435_v31 = vld [vmem:[%s1924_s4 + $0xd8] sm:$0xff]   ;;  %v1438_v34 = vld [vmem:[%s1924_s4 + $0x60] sm:$0xff]   ;;  %v1442_v38 = vld [vmem:[%s1924_s4 + $0x68] sm:$0xff]  }
   0xc   :  { %166 = vmatprep.subr.bf16.mxu0 %v1416_v13  ;;  %207 = vmatprep.subr.bf16.mxu1 %v1418_v14  ;;  %v1436_v32 = vld [vmem:[%s1924_s4 + $0x18] sm:$0xff]   ;;  %v1439_v35 = vld [vmem:[%s1924_s4 + $0xe0] sm:$0xff]   ;;  %v1443_v39 = vld [vmem:[%s1924_s4 + $0xe8] sm:$0xff]  }
   0xd   :  { %v1437_v33 = vld [vmem:[%s1924_s4 + $0x98] sm:$0xff]   ;;  %v1440_v36 = vld [vmem:[%s1924_s4 + $0x20] sm:$0xff]   ;;  %v1444_v40 = vld [vmem:[%s1924_s4 + $0x28] sm:$0xff]  }
   0xe   :  { %v1441_v37 = vld [vmem:[%s1924_s4 + $0xa0] sm:$0xff]   ;;  %v1445_v41 = vld [vmem:[%s1924_s4 + $0xa8] sm:$0xff]  }
   0xf   :  { %167 = vmatpush1.bf16.msra.mxu0 %v1420_v15  ;;  %208 = vmatpush1.bf16.msra.mxu1 %v1421_v16 }
  0x10   :  { %1293 = vmatprep.subr.bf16.mxu0 %v1422_v17  ;;  %1315 = vmatprep.subr.bf16.mxu1 %v1423_v18 }
  0x12   :  { %1212 = vmatmul.mubr.msk.bf16.vlgmr.msra.gmra.mrb[0].mxu0 %vm156_vm0, %v37_v19  ;;  %1213 = vmatmul.mubr.msk.bf16.vlgmr.msra.gmra.mrb[0].mxu1 %vm156_vm0, %v37_v19 }
  0x13   :  { %1294 = vmatpush3.bf16.msra.mxu0 %v1424_v20  ;;  %1316 = vmatpush3.bf16.msra.mxu1 %v1425_v21 }
  0x14   :  { %1295 = vmatprep.subr.bf16.mxu0 %v1426_v22  ;;  %1317 = vmatprep.subr.bf16.mxu1 %v1427_v23 }
  0x17   :  { %1296 = vmatpush3.bf16.msra.mxu0 %v1428_v24  ;;  %1318 = vmatpush3.bf16.msra.mxu1 %v1429_v25 }
  0x18   :  { %1297 = vmatprep.subr.bf16.mxu0 %v1430_v26  ;;  %1319 = vmatprep.subr.bf16.mxu1 %v1431_v27 }
  0x1b   :  { %1298 = vmatpush3.bf16.msra.mxu0 %v1432_v28  ;;  %1320 = vmatpush3.bf16.msra.mxu1 %v1433_v29 }
  0x1c   :  { %1299 = vmatprep.subr.bf16.mxu0 %v1434_v30  ;;  %1321 = vmatprep.subr.bf16.mxu1 %v1435_v31 }
  0x1f   :  { %1300 = vmatpush3.bf16.msra.mxu0 %v1436_v32  ;;  %1322 = vmatpush3.bf16.msra.mxu1 %v1437_v33 }
  0x20   :  { %1301 = vmatprep.subr.bf16.mxu0 %v1438_v34  ;;  %1323 = vmatprep.subr.bf16.mxu1 %v1439_v35 }
  0x23   :  { %1302 = vmatpush3.bf16.msra.mxu0 %v1440_v36  ;;  %1324 = vmatpush3.bf16.msra.mxu1 %v1441_v37 }
  0x24   :  { %1303 = vmatprep.subr.bf16.mxu0 %v1442_v38  ;;  %1325 = vmatprep.subr.bf16.mxu1 %v1443_v39 }
  0x27   :  { %1304 = vmatpush3.bf16.msra.mxu0 %v1444_v40  ;;  %1326 = vmatpush3.bf16.msra.mxu1 %v1445_v41 }
  0x28   :  { %15 = vsyncpa [#allocation3], 0  ;;  %v1446_v42 = vld [vmem:[%s1924_s4 + $0x70] sm:$0xff]   ;;  %v1450_v46 = vld [vmem:[%s1924_s4 + $0x78] sm:$0xff]   ;;  %v56_v50 = vlaneseq  ;;  %v1527_v25 = vmov 0.0   ;;  %s1528_s23 = smov 64  }
  0x29   :  { %v1447_v43 = vld [vmem:[%s1924_s4 + $0xf0] sm:$0xff]   ;;  %1305 = vmatprep.subr.bf16.mxu0 %v1446_v42  ;;  %v1451_v47 = vld [vmem:[%s1924_s4 + $0xf8] sm:$0xff]   ;;  %v54_v54 = vld [vmem:[%s1923_s3] sm:$0xf]  ;;  %vm692_vm1 = vcmask 261120   ;;  %vm1529_vm2 = vmmov 0  }
  0x2a   :  { %v1448_v44 = vld [vmem:[%s1924_s4 + $0x30] sm:$0xff]   ;;  %1327 = vmatprep.subr.bf16.mxu1 %v1447_v43  ;;  %v1452_v48 = vld [vmem:[%s1924_s4 + $0x38] sm:$0xff]   ;;  %v1738_v51 = vshrl.u32 %v56_v50, 7  ;;  %v1459_v19 = vld [vmem:[%s1926_s6 + $0xc] ss:$20 sps:$4 sm:$0xff]   ;;  %vm1174_vm3 = vcmask 785920  }
  0x2b   :  { %v1449_v45 = vld [vmem:[%s1924_s4 + $0xb0] sm:$0xff]   ;;  %1306 = vmatpush3.bf16.msra.mxu0 %v1448_v44  ;;  %v1453_v49 = vld [vmem:[%s1924_s4 + $0xb8] sm:$0xff]   ;;  %v1468_v26 = vld [vmem:[%s1928_s8 + $0x40] sm:$0xff]   ;;  %vm1180_vm4 = vcmask 794368  }
  0x2c   :  { %1328 = vmatpush3.bf16.msra.mxu1 %v1449_v45  ;;  %1307 = vmatprep.subr.bf16.mxu0 %v1450_v46  ;;  %v58_v52 = vsub.s32 0, %v1738_v51  ;;  %v66_v53 = vsub.s32 2, %v1738_v51  ;;  %v62_v55 = vsub.s32 1, %v1738_v51  ;;  %v70_v56 = vsub.s32 3, %v1738_v51  ;;  %v1456_v18 = vld [vmem:[%s1926_s6 + $0x4] ss:$20 sps:$4 sm:$0xff]  }
  0x2d   :  { %1329 = vmatprep.subr.bf16.mxu1 %v1451_v47  ;;  %v1454_v20 = vld [vmem:[%s1926_s6] ss:$20 sps:$4 sm:$0xff]   ;;  %v1457_v21 = vld [vmem:[%s1926_s6 + $0x8] ss:$20 sps:$4 sm:$0xff]   ;;  %v1463_v24 = vld [vmem:[%s1926_s6 + $0x30] ss:$20 sps:$4 sm:$0xff]  }
  0x2e   :  { %v59_v57 = vrot.slane %v54_v54, %v58_v52  ;;  %v67_v58 = vrot.slane %v54_v54, %v66_v53  ;;  %v63_v59 = vrot.slane %v54_v54, %v62_v55  ;;  %v71_v60 = vrot.slane %v54_v54, %v70_v56  ;;  %v1465_v22 = vld [vmem:[%s1926_s6 + $0x34] ss:$20 sps:$4 sm:$0xff]   ;;  %v1214_v29 = vld [vmem:[%s1925_s5] ss:$0 sm:$0xff]  ;;  %v1466_v47 = vld [vmem:[%s1926_s6 + $0x10] ss:$20 sps:$4 sm:$0xff]  }
  0x2f   :  { %1308 = vmatpush3.bf16.msra.mxu0 %v1452_v48  ;;  %v1460_v23 = vld [vmem:[%s1926_s6 + $0x28] ss:$20 sps:$4 sm:$0xff]   ;;  %v593_v42 = vld [vmem:[%s1921_s1] sm:$0xf]  ;;  %v1467_v54 = vld [vmem:[%s1926_s6 + $0x38] ss:$20 sps:$4 sm:$0xff]  }
  0x30   :  { %1330 = vmatpush3.bf16.msra.mxu1 %v1453_v49  ;;  %696 = vmatprep.subr.bf16.mxu0 %v1456_v18  ;;  %v594_v43 = vunpack.c.l.bf16 %v593_v42  ;;  %v1470_v49 = vld [vmem:[%s1928_s8] sm:$0xff]   ;;  %v1472_v50 = vld [vmem:[%s1928_s8 + $0x48] sm:$0xff]   ;;  %v1495_v18 = vld [vmem:[%s1928_s8 + $0xb0] sm:$0xff]  }
  0x31   :  { %737 = vmatprep.subr.bf16.mxu1 %v1459_v19  ;;  %v1496_v19 = vld [vmem:[%s1928_s8 + $0x78] sm:$0xff]  }
  0xe5   :  { %v194_v61 = vpop.f32.mrb[0].mxu0  ;;  %v235_v62 = vpop.f32.mrb[0].mxu1 }
  0xe6   :  { %v195_v63 = vadd.f32 %v194_v61, %v59_v57  ;;  %v236_v0 = vadd.f32 %v235_v62, %v67_v58  ;;  %v196_v1 = vpop.f32.mrb[1].mxu0  ;;  %v237_v3 = vpop.f32.mrb[1].mxu1  ;;  %v1469_v57 = vld [vmem:[%s1928_s8 + $0xc0] sm:$0xff]   ;;  %v1474_v58 = vld [vmem:[%s1928_s8 + $0x8] sm:$0xff]   ;;  %v1478_v62 = vld [vmem:[%s1928_s8 + $0x10] sm:$0xff]  }
  0xe7   :  { %v197_v4 = vadd.f32 %v196_v1, %v63_v59  ;;  %v238_v5 = vadd.f32 %v237_v3, %v71_v60  ;;  %v198_v6 = vpop.f32.mrb[2].mxu0  ;;  %v239_v7 = vpop.f32.mrb[2].mxu1  ;;  %v1476_v59 = vld [vmem:[%s1928_s8 + $0x50] sm:$0xff]   ;;  %v1471_v60 = vld [vmem:[%s1928_s8 + $0x80] sm:$0xff]   ;;  %v1473_v61 = vld [vmem:[%s1928_s8 + $0xc8] sm:$0xff]  }
  0xe8   :  { %v242_v8 = vmax.f32 %v195_v63, 0.0  ;;  %v244_v9 = vmax.f32 %v236_v0, 0.0  ;;  %v199_v10 = vpop.f32.mrb[3].mxu0  ;;  %v240_v11 = vpop.f32.mrb[3].mxu1  ;;  %v1480_v63 = vld [vmem:[%s1928_s8 + $0x58] sm:$0xff]   ;;  %v1475_v0 = vld [vmem:[%s1928_s8 + $0x88] sm:$0xff]  }
  0xe9   :  { %v243_v12 = vmax.f32 %v197_v4, 0.0  ;;  %v245_v13 = vmax.f32 %v238_v5, 0.0  ;;  %v1477_v1 = vld [vmem:[%s1928_s8 + $0xd0] sm:$0xff]   ;;  %v1482_v3 = vld [vmem:[%s1928_s8 + $0x18] sm:$0xff]   ;;  %v1484_v4 = vld [vmem:[%s1928_s8 + $0x60] sm:$0xff]  }
  0xea   :  { %v248_v14 = vpack.c.bf16 %v244_v9, %v244_v9  ;;  %v246_v17 = vpack.c.bf16 %v242_v8, %v242_v8  ;;  %v1479_v5 = vld [vmem:[%s1928_s8 + $0x90] sm:$0xff]   ;;  %v1481_v6 = vld [vmem:[%s1928_s8 + $0xd8] sm:$0xff]   ;;  %v1486_v7 = vld [vmem:[%s1928_s8 + $0x20] sm:$0xff]  }
  0xeb   :  { %v247_v15 = vpack.c.bf16 %v243_v12, %v243_v12  ;;  %v249_v16 = vpack.c.bf16 %v245_v13, %v245_v13  ;;  %v1488_v8 = vld [vmem:[%s1928_s8 + $0x68] sm:$0xff]   ;;  %v1483_v9 = vld [vmem:[%s1928_s8 + $0x98] sm:$0xff]   ;;  %v1485_v10 = vld [vmem:[%s1928_s8 + $0xe0] sm:$0xff]  }
  0xec   :  { %v1490_v11 = vld [vmem:[%s1928_s8 + $0x28] sm:$0xff]   ;;  %v1487_v12 = vld [vmem:[%s1928_s8 + $0xa0] sm:$0xff]  }
  0xed   :  { %545 = vmatprep.mubr.bf16.mxu0 %v247_v15  ;;  %585 = vmatprep.mubr.bf16.mxu1 %v249_v16  ;;  %v1489_v13 = vld [vmem:[%s1928_s8 + $0xe8] sm:$0xff]   ;;  %v1492_v15 = vld [vmem:[%s1928_s8 + $0x70] sm:$0xff]  }
  0xee   :  { %546 = vmatmul.mubr.bf16.vlgmr.msra.gmra.mrb[4].mxu0 %v246_v17  ;;  %586 = vmatmul.mubr.bf16.vlgmr.msra.gmra.mrb[4].mxu1 %v248_v14  ;;  %v1491_v14 = vld [vmem:[%s1928_s8 + $0xa8] sm:$0xff]   ;;  %v1493_v16 = vld [vmem:[%s1928_s8 + $0xf0] sm:$0xff]  }
  0xef   :  { %728 = vmatprep.mubr.bf16.mxu0 %v1526_v2  ;;  %769 = vmatprep.mubr.bf16.mxu1 %v1526_v2  ;;  %v1462_v2 = vld [vmem:[%s1926_s6 + $0x2c] ss:$20 sps:$4 sm:$0xff]   ;;  %v1494_v17 = vld [vmem:[%s1928_s8 + $0x30] sm:$0xff]   ;;  %s1531_s6 = smov [#allocation2]  }
  0xf0   :  { %697 = vmatpush1.bf16.msra.mxu0 %v1454_v20  ;;  %738 = vmatpush1.bf16.msra.mxu1 %v1457_v21  ;;  %v1497_v20 = vld [vmem:[%s1928_s8 + $0xf8] sm:$0xff]   ;;  %s1188_s16 = sshll.u32 %s1531_s6, 4  ;;  %s1189_s16 = int_to_ptr.vmem [resolvable:$true] %s1188_s16 }
  0xf1   :  { %698 = vmatprep.subr.bf16.mxu0 %v1462_v2  ;;  %739 = vmatprep.subr.bf16.mxu1 %v1465_v22  ;;  %v1498_v21 = vld [vmem:[%s1928_s8 + $0x38] sm:$0xff]   ;;  %v613_v22 = vld [vmem:[%s1927_s7] sm:$0x1f]  ;;  %s1530_s7 = smov 96   ;;  %p1507_p1 = scmp.lt.s32.totalorder %s1189_s16, %s1189_s16 }
  0xf2   :  { %v1499_v2 = vld [vmem:[%s1928_s8 + $0xb8] sm:$0xff]  }
  0xf4   :  { %699 = vmatpush1.bf16.msra.mxu0 %v1460_v23  ;;  %740 = vmatpush1.bf16.msra.mxu1 %v1463_v24  ;;  %v618_v23 = vrot.slane %v613_v22, %v58_v52  ;;  %v626_v24 = vrot.slane %v613_v22, %v66_v53 }
  0xf5   :  { %1384 = vmatprep.subr.bf16.mxu0 %v1527_v25  ;;  %1340 = vmatprep.subr.bf16.mxu1 %v1468_v26  ;;  %v630_v26 = vrot.slane %v613_v22, %v70_v56 }
 0x1c1   :  { %v1309_v27 = vpop.f32.mrb[4].mxu0  ;;  %v1331_v28 = vpop.f32.mrb[4].mxu1 }
 0x1c2   :  { %v1310_v30 = vpop.f32.mrb[5].mxu0  ;;  %v1332_v31 = vpop.f32.mrb[5].mxu1 }
 0x1c3   :  { %v1311_v32 = vadd.f32 %v1310_v30, %v1309_v27  ;;  %v1333_v33 = vadd.f32 %v1332_v31, %v1331_v28  ;;  %v1312_v34 = vpop.f32.mrb[6].mxu0  ;;  %v1334_v35 = vpop.f32.mrb[6].mxu1 }
 0x1c4   :  { %v1313_v36 = vpop.f32.mrb[7].mxu0  ;;  %v1335_v37 = vpop.f32.mrb[7].mxu1 }
 0x1c5   :  { %v548_v38 = vadd.f32 %v1311_v32, %v1214_v29 }
 0x1c7   :  { %v588_v39 = vadd.f32 %v1333_v33, %v548_v38  ;;  %v633_v33 = vsub.s32 4, %v1738_v51 }
 0x1c9   :  { %v595_v40 = vmul.f32 0.5, %v588_v39  ;;  %1171 = vrot.lane.b32.xlu0 %v588_v39, %s1528_s23 }
 0x1cb   :  { %v596_v41 = vmul.f32 1.442695, %v595_v40 }
 0x1cd   :  { %1500 = vpow2.f32 %v596_v41  ;;  %v634_v41 = vrot.slane %v613_v22, %v633_v33 }
 0x1d7   :  { %v1501_v44 = vpop.eup %1500 }
 0x1d8   :  { %v598_v45 = vmul.f32 %v1501_v44, %v594_v43 }
 0x1da   :  { %v599_v46 = vadd.f32 %v598_v45, %v588_v39 }
 0x1dc   :  { %v600_v48 = vpack.c.bf16 %v599_v46, %v599_v46 }
 0x1de   :  { %1257 = vmatmul.mubr.msk.bf16.vlgmr.msra.gmra.mrb[8].mxu0 %vm692_vm1, %v600_v48  ;;  %1258 = vmatmul.mubr.msk.bf16.vlgmr.msra.gmra.mrb[8].mxu1 %vm692_vm1, %v600_v48 }
 0x1df   :  { %1385 = vmatpush3.bf16.msra.mxu0 %v1466_v47  ;;  %1388 = vmatprep.mubr.msk.bf16.mxu0 %vm1529_vm2, %v1527_v25 }
 0x1e0   :  { %1386 = vmatprep.subr.bf16.mxu0 %v1527_v25  ;;  %1341 = vmatpush3.bf16.msra.mxu1 %v1470_v49  ;;  %v622_v25 = vrot.slane %v613_v22, %v62_v55 }
 0x1e1   :  { %1342 = vmatprep.subr.bf16.mxu1 %v1472_v50 }
 0x1e3   :  { %1387 = vmatpush3.bf16.msra.mxu0 %v1467_v54  ;;  %v1260_v54 = vld [vmem:[%s1929_s9] ss:$0 sm:$0xff]  ;;  %s1502_s9 = scalar_lea.vmem %s1189_s16, 128 }
 0x1e4   :  { %1362 = vmatprep.subr.bf16.mxu0 %v1469_v57  ;;  %1343 = vmatpush3.bf16.msra.mxu1 %v1474_v58  ;;  %p1503_p0 = scmp.ne.s32.totalorder %s1189_s16, %s1502_s9  ;;  %p1508_p2 = scmp.lt.s32.totalorder %s1502_s9, %s1502_s9 }
 0x1e5   :  { %1344 = vmatprep.subr.bf16.mxu1 %v1476_v59 }
 0x1e6   :  { %1389 = vmatmul.mubr.msk.bf16.vlgmr.msra.gmra.mrb[12].mxu0 %vm692_vm1, %v600_v48  ;;  %p1509_p3 = por %p1508_p2, %p1507_p1 }
 0x1e7   :  { %1363 = vmatpush3.bf16.msra.mxu0 %v1471_v60 }
 0x1e8   :  { %1364 = vmatprep.subr.bf16.mxu0 %v1473_v61  ;;  %1345 = vmatpush3.bf16.msra.mxu1 %v1478_v62  ;;  %p1510_p4 = pnand %p1509_p3, %p1503_p0 }
 0x1e9   :  { %1346 = vmatprep.subr.bf16.mxu1 %v1480_v63 }
 0x1eb   :  { %1365 = vmatpush3.bf16.msra.mxu0 %v1475_v0 }
 0x1ec   :  { %1366 = vmatprep.subr.bf16.mxu0 %v1477_v1  ;;  %1347 = vmatpush3.bf16.msra.mxu1 %v1482_v3 }
 0x1ed   :  { %1348 = vmatprep.subr.bf16.mxu1 %v1484_v4 }
 0x1ef   :  { %1367 = vmatpush3.bf16.msra.mxu0 %v1479_v5 }
 0x1f0   :  { %1368 = vmatprep.subr.bf16.mxu0 %v1481_v6  ;;  %1349 = vmatpush3.bf16.msra.mxu1 %v1486_v7 }
 0x1f1   :  { %1350 = vmatprep.subr.bf16.mxu1 %v1488_v8 }
 0x1f3   :  { %1369 = vmatpush3.bf16.msra.mxu0 %v1483_v9 }
 0x1f4   :  { %1370 = vmatprep.subr.bf16.mxu0 %v1485_v10  ;;  %1351 = vmatpush3.bf16.msra.mxu1 %v1490_v11 }
 0x1f5   :  { %1352 = vmatprep.subr.bf16.mxu1 %v1492_v15 }
 0x1f7   :  { %1371 = vmatpush3.bf16.msra.mxu0 %v1487_v12 }
 0x1f8   :  { %1372 = vmatprep.subr.bf16.mxu0 %v1489_v13  ;;  %1353 = vmatpush3.bf16.msra.mxu1 %v1494_v17 }
 0x1f9   :  { %1354 = vmatprep.subr.bf16.mxu1 %v1496_v19 }
 0x1fb   :  { %1373 = vmatpush3.bf16.msra.mxu0 %v1491_v14 }
 0x1fc   :  { %1374 = vmatprep.subr.bf16.mxu0 %v1493_v16  ;;  %1355 = vmatpush3.bf16.msra.mxu1 %v1498_v21 }
 0x1ff   :  { %1375 = vmatpush3.bf16.msra.mxu0 %v1495_v18 }
 0x200   :  { %1376 = vmatprep.subr.bf16.mxu0 %v1497_v20 }
 0x203   :  { %1377 = vmatpush3.bf16.msra.mxu0 %v1499_v2 }
 0x23b   :  { %v1172_v3 = vpop.permute.xlu0 %1171 }
 0x2b1   :  { %v730_v27 = vpop.f32.mrb[8].mxu0  ;;  %v771_v28 = vpop.f32.mrb[8].mxu1 }
 0x2b2   :  { %v731_v29 = vadd.f32 %v730_v27, %v618_v23  ;;  %v772_v30 = vadd.f32 %v771_v28, %v626_v24  ;;  %v732_v31 = vpop.f32.mrb[9].mxu0  ;;  %v773_v32 = vpop.f32.mrb[9].mxu1 }
 0x2b3   :  { %v733_v34 = vadd.f32 %v732_v31, %v622_v25  ;;  %v774_v35 = vadd.f32 %v773_v32, %v630_v26  ;;  %v734_v52 = vpop.f32.mrb[10].mxu0  ;;  %v775_v36 = vpop.f32.mrb[10].mxu1 }
 0x2b4   :  { %v818_v37 = vmax.f32 %v731_v29, 0.0  ;;  %v820_v53 = vmax.f32 %v772_v30, 0.0  ;;  %v735_v38 = vpop.f32.mrb[11].mxu0  ;;  %v776_v39 = vpop.f32.mrb[11].mxu1 }
 0x2b5   :  { %v819_v55 = vmax.f32 %v733_v34, 0.0  ;;  %v821_v40 = vmax.f32 %v774_v35, 0.0 }
 0x2b6   :  { %v822_v43 = vpack.c.bf16 %v818_v37, %v818_v37  ;;  %v824_v44 = vpack.c.bf16 %v820_v53, %v820_v53 }
 0x2b7   :  { %v823_v56 = vpack.c.bf16 %v819_v55, %v819_v55  ;;  %v825_v42 = vpack.c.bf16 %v821_v40, %v821_v40 }
 0x2b9   :  { %v812_v45 = vpop.f32.mrb[12].mxu0  ;;  %1121 = vmatprep.mubr.bf16.mxu1 %v823_v56  ;;  %1161 = vmatprep.mubr.bf16.mxu0 %v825_v42 }
 0x2ba   :  { %v813_v46 = vadd.f32 %v812_v45, %v634_v41  ;;  %v1390_v51 = vpop.f32.mrb[13].mxu0  ;;  %1122 = vmatmul.mubr.bf16.vlgmr.msra.gmra.mrb[12].mxu1 %v822_v43  ;;  %1162 = vmatmul.mubr.bf16.vlgmr.msra.gmra.mrb[16].mxu0 %v824_v44 }
 0x2bb   :  { %v815_v47 = vpop.f32.mrb[14].mxu0 }
 0x2bc   :  { %1177 = vrot.lane.b32.xlu0 %v813_v46, %s1530_s7  ;;  %v1391_v48 = vpop.f32.mrb[15].mxu0 }
 0x32e   :  { %v1178_v5 = vpop.permute.xlu0 %1177 }
 0x38d   :  { %v1356_v49 = vpop.f32.mrb[12].mxu1  ;;  %v1378_v50 = vpop.f32.mrb[16].mxu0 }
 0x38e   :  { %v1357_v57 = vpop.f32.mrb[13].mxu1  ;;  %v1379_v58 = vpop.f32.mrb[17].mxu0 }
 0x38f   :  { %v1358_v59 = vadd.f32 %v1357_v57, %v1356_v49  ;;  %v1380_v60 = vadd.f32 %v1379_v58, %v1378_v50  ;;  %v1359_v61 = vpop.f32.mrb[14].mxu1  ;;  %v1381_v62 = vpop.f32.mrb[18].mxu0 }
 0x390   :  { %v1360_v63 = vpop.f32.mrb[15].mxu1  ;;  %v1382_v0 = vpop.f32.mrb[19].mxu0 }
 0x391   :  { %v1124_v1 = vadd.f32 %v1358_v59, %v1260_v54 }
 0x393   :  { %v1164_v4 = vadd.f32 %v1380_v60, %v1124_v1 }
 0x395   :  { %1169 = vst.msk [vmem:[#allocation2] sm:$0xff] %vm156_vm0, %v1164_v4 }
 0x396   :  { %1175 = vst.msk [vmem:[#allocation2] sm:$0xff] %vm1174_vm3, %v1172_v3 }
 0x397   :  { %1181 = vst.msk [vmem:[#allocation2] sm:$0xff] %vm1180_vm4, %v1178_v5 }
 0x398   :  { %1513 = shalt.err (!%p1510_p4)
}
 0x399   :  { %s1514_s18 = scalar_lea.hbm %s1930_s10, 128 }
 0x39a   :  { %p1515_p5 = scmp.ne.s32.totalorder %s1930_s10, %s1514_s18  ;;  %p1518_p6 = scmp.lt.u32.totalorder %s1514_s18, %s1930_s10 }
 0x39c   :  { %p1520_p7 = pnand %p1518_p6, %p1515_p5 }
 0x39e   :  { %1523 = shalt.err (!%p1520_p7)
}
 0x39f   :  { %1191 = dma.vmem_to_hbm [thread:$0]  %s1189_s16, 128, %s1930_s10, [#allocation3]  }
 0x3a0   :  { %1524 = dma.done.wait [#allocation3], 128  }
 0x3a1   :  { %1525 = vsyncadd [#allocation3], 4294967168 }
 0x3a2   :  { %1195 = vsyncpa [#allocation3], 1 }

</bundles_post_ra>
